<compile_context>
chip_gen: v5e
topology: v5e:2x2
jax: 0.10.0
libtpu: 0.0.40
codegen_flags: <defaults>
</compile_context>

<pallas_src>
import jax
import jax.numpy as jnp
from jax.experimental import pallas as pl
from jax.experimental.pallas import tpu as pltpu


def focus_kernel(x_ref, w_ref, b_ref, o_ref):
    # x_ref : (Cin4, M)       lane-major space-to-depth activations, M = N*H2*W2
    # w_ref : (Cb,   Cin4)    BN-scale-folded 1x1 conv weights (this Cout block)
    # b_ref : (Cb,   1)       folded BN shift (per output channel)
    # o_ref : (Cb,   M)       lane-dense output slab
    y = jnp.dot(w_ref[...], x_ref[...], preferred_element_type=jnp.float32)
    y = y + b_ref[...]                      # bias broadcast along the lane axis
    sig = 1.0 / (1.0 + jnp.exp(-y))         # exact sigmoid (EUP exp + divide)
    o_ref[...] = (y * sig).astype(o_ref.dtype)


def focus_forward(x, conv_w, bn_gamma, bn_beta, bn_mean, bn_var, eps=1e-3):
    """x: (N, C1, H, W) float32 NCHW (PyTorch layout).
    conv_w: (C2, 4*C1, 1, 1). Returns (N, C2, H//2, W//2) NCHW."""
    N, C1, H, W = x.shape
    Cout = conv_w.shape[0]
    Cin4 = 4 * C1
    H2, W2 = H // 2, W // 2
    M = N * H2 * W2

    # --- space-to-depth, exactly the PyTorch Focus channel ordering ---------
    x_s2d = jnp.concatenate(
        [x[:, :, ::2, ::2],    # even rows, even cols
         x[:, :, 1::2, ::2],   # odd  rows, even cols
         x[:, :, ::2, 1::2],   # even rows, odd  cols
         x[:, :, 1::2, 1::2]], # odd  rows, odd  cols
        axis=1)                                    # (N, 4*C1, H2, W2)

    # Lane-major operand: channels on sublanes, N*H2*W2 on the 128-lane axis.
    xin = (x_s2d.reshape(N, Cin4, H2 * W2)
                 .transpose(1, 0, 2)
                 .reshape(Cin4, M))                # (Cin4, M)

    # Fold BN (inference) into the 1x1 conv: scale into weights, shift = bias.
    scale = bn_gamma / jnp.sqrt(bn_var + eps)
    shift = bn_beta - bn_mean * scale
    w = conv_w.reshape(Cout, Cin4) * scale[:, None]   # (Cout, Cin4)
    b = shift.reshape(Cout, 1)                        # (Cout, 1)

    # Split Cout into two sublane blocks so v7x's 2 TCs can take one each.
    block_co = 16 if (Cout % 16 == 0 and Cout > 16) else Cout
    grid_co = Cout // block_co

    out = pl.pallas_call(
        focus_kernel,
        out_shape=jax.ShapeDtypeStruct((Cout, M), jnp.float32),
        grid=(grid_co,),
        in_specs=[
            pl.BlockSpec((Cin4, M), lambda i: (0, 0)),         # resident
            pl.BlockSpec((block_co, Cin4), lambda i: (i, 0)),
            pl.BlockSpec((block_co, 1), lambda i: (i, 0)),
        ],
        out_specs=pl.BlockSpec((block_co, M), lambda i: (i, 0)),
        compiler_params=pltpu.CompilerParams(
            dimension_semantics=("parallel",)),
    )(xin, w, b)

    # Back to NCHW like the PyTorch module output.
    return out.reshape(Cout, N, H2, W2).transpose(1, 0, 2, 3)


def reference_forward(x, conv_w, bn_gamma, bn_beta, bn_mean, bn_var, eps=1e-3):
    """Pure-JAX reference of Focus (NCHW, inference BN, SiLU)."""
    x_s2d = jnp.concatenate(
        [x[:, :, ::2, ::2], x[:, :, 1::2, ::2],
         x[:, :, ::2, 1::2], x[:, :, 1::2, 1::2]], axis=1)
    Cout = conv_w.shape[0]
    w = conv_w.reshape(Cout, -1)
    y = jnp.einsum('oc,nchw->nohw', w, x_s2d)
    scale = bn_gamma / jnp.sqrt(bn_var + eps)
    shift = bn_beta - bn_mean * scale
    y = y * scale[None, :, None, None] + shift[None, :, None, None]
    return y * jax.nn.sigmoid(y)


if __name__ == "__main__":
    # Focus(c1=4, c2=32, k=1, s=1, act=True); BatchNorm2d eps=0.001.
    N, C1, H, W = 2, 4, 16, 16
    C2 = 32
    eps = 1e-3

    key = jax.random.PRNGKey(0)
    k_x, k_w, k_g, k_b, k_m, k_v = jax.random.split(key, 6)

    x = jax.random.normal(k_x, (N, C1, H, W), dtype=jnp.float32)
    conv_w = 0.1 * jax.random.normal(k_w, (C2, 4 * C1, 1, 1), dtype=jnp.float32)
    gamma = 1.0 + 0.1 * jax.random.normal(k_g, (C2,), dtype=jnp.float32)
    beta = 0.1 * jax.random.normal(k_b, (C2,), dtype=jnp.float32)
    running_mean = 0.1 * jax.random.normal(k_m, (C2,), dtype=jnp.float32)
    running_var = jnp.abs(1.0 + 0.1 * jax.random.normal(k_v, (C2,), dtype=jnp.float32))

    out = focus_forward(x, conv_w, gamma, beta, running_mean, running_var, eps)
    out = jax.block_until_ready(out)

    ref = reference_forward(x, conv_w, gamma, beta, running_mean, running_var, eps)
    assert out.shape == (N, C2, H // 2, W // 2), out.shape
    assert jnp.allclose(out, ref, atol=1e-4, rtol=1e-4), (
        float(jnp.max(jnp.abs(out - ref))))

    print("KERNEL_OK")
</pallas_src>

<mosaic_0001>
module attributes {stable_mosaic.version = 11 : i64} {
  func.func @focus_kernel(%arg0: i32, %arg1: memref<16x128xf32, #tpu.memory_space<vmem>>, %arg2: memref<16x16xf32, #tpu.memory_space<vmem>>, %arg3: memref<16x1xf32, #tpu.memory_space<vmem>>, %arg4: memref<16x128xf32, #tpu.memory_space<vmem>>) attributes {dimension_semantics = [#tpu.dimension_semantics<parallel>], iteration_bounds = array<i64: 2>, scalar_prefetch = 0 : i64, scratch_operands = 0 : i64, tpu.core_type = #tpu.core_type<tc>, window_params = [{pipeline_mode = #tpu.pipeline_mode<synchronous>, transform_indices = @transform_0, window_bounds = array<i64: 16, 128>}, {transform_indices = @transform_1, window_bounds = array<i64: 16, 16>}, {transform_indices = @transform_2, window_bounds = array<i64: 16, 1>}, {transform_indices = @transform_3, window_bounds = array<i64: 16, 128>}]} {
    %c0 = arith.constant 0 : index
    %c0_0 = arith.constant 0 : index
    %0 = vector.load %arg2[%c0, %c0_0] : memref<16x16xf32, #tpu.memory_space<vmem>>, vector<16x16xf32>
    %c0_1 = arith.constant 0 : index
    %c0_2 = arith.constant 0 : index
    %1 = vector.load %arg1[%c0_1, %c0_2] : memref<16x128xf32, #tpu.memory_space<vmem>>, vector<16x128xf32>
    %cst = arith.constant dense<0.000000e+00> : vector<16x128xf32>
    %2 = tpu.matmul %0, %1, %cst {dimension_numbers = #tpu.dot_dimension_numbers<[1], [0], [0], [1], [0, 0, 1, 1], [], []>} : vector<16x16xf32>, vector<16x128xf32>, vector<16x128xf32> -> vector<16x128xf32>
    %c0_3 = arith.constant 0 : index
    %c0_4 = arith.constant 0 : index
    %3 = vector.load %arg3[%c0_3, %c0_4] : memref<16x1xf32, #tpu.memory_space<vmem>>, vector<16x1xf32>
    %4 = vector.broadcast %3 : vector<16x1xf32> to vector<16x128xf32>
    %5 = arith.addf %2, %4 : vector<16x128xf32>
    %cst_5 = arith.constant 0.000000e+00 : f32
    %6 = vector.broadcast %cst_5 : f32 to vector<16x128xf32>
    %7 = arith.subf %6, %5 : vector<16x128xf32>
    %8 = math.exp %7 : vector<16x128xf32>
    %cst_6 = arith.constant 1.000000e+00 : f32
    %9 = vector.broadcast %cst_6 : f32 to vector<16x128xf32>
    %10 = arith.addf %9, %8 : vector<16x128xf32>
    %cst_7 = arith.constant 1.000000e+00 : f32
    %11 = vector.broadcast %cst_7 : f32 to vector<16x128xf32>
    %12 = arith.divf %11, %10 : vector<16x128xf32>
    %13 = arith.mulf %5, %12 : vector<16x128xf32>
    %c0_8 = arith.constant 0 : index
    %c0_9 = arith.constant 0 : index
    %14 = vector.load %arg4[%c0_8, %c0_9] : memref<16x128xf32, #tpu.memory_space<vmem>>, vector<16x128xf32>
    tpu.vector_store %arg4[%c0_8, %c0_9], %13 {strides = array<i32>} : memref<16x128xf32, #tpu.memory_space<vmem>>, vector<16x128xf32>,
    return
  }
  func.func @transform_0(%arg0: i32) -> (i32, i32) {
    %c0_i32 = arith.constant 0 : i32
    %c0_i32_0 = arith.constant 0 : i32
    %c0_i32_1 = arith.constant 0 : i32
    return %c0_i32, %c0_i32_0 : i32, i32
  }
  func.func @transform_1(%arg0: i32) -> (i32, i32) {
    %c0_i32 = arith.constant 0 : i32
    %c0_i32_0 = arith.constant 0 : i32
    return %arg0, %c0_i32 : i32, i32
  }
  func.func @transform_2(%arg0: i32) -> (i32, i32) {
    %c0_i32 = arith.constant 0 : i32
    %c0_i32_0 = arith.constant 0 : i32
    return %arg0, %c0_i32 : i32, i32
  }
  func.func @transform_3(%arg0: i32) -> (i32, i32) {
    %c0_i32 = arith.constant 0 : i32
    %c0_i32_0 = arith.constant 0 : i32
    return %arg0, %c0_i32 : i32, i32
  }
}

</mosaic_0001>

<bundles_post_ra>
// kernel: tpu_custom_call.1
= control target key start
LH: loop header
LB: loop body
LE: loop exit
PB: predicated region body
PF: predicated region fallthrough
CT: control target
= control target key end

     0   :  { %8 = vsyncpa [#allocation3], 0  ;;  %s626_s0 = inlined_call_operand.vmem [shape: f32[16,128], index: 0, kind: input, shape index: {}]   ;;  %s627_s1 = inlined_call_operand.vmem [shape: f32[32,16], index: 1, kind: input, shape index: {}]   ;;  %s628_s2 = inlined_call_operand.vmem [shape: f32[32,1], index: 2, kind: input, shape index: {}]   ;;  %s629_s3 = inlined_call_operand.hbm [shape: f32[32,128], index: 3, kind: output, shape index: {}]  }
   0x1   :  { %10 = vsyncpa [#allocation3 + $0x1], 0  ;;  %s529_s12 = smov 0   ;;  %s531_s13 = smov 0  }
   0x2   :  { %s533_s14 = smov 0   ;;  %s535_s15 = smov 0  }
   0x3 LB: > { %s550_s16 = sadd.s32 4294967295, %s504_s15   ;;  %s372_s17 = sadd.s32 4294967294, %s504_s15   ;;  %s504_s15 = sphi %s535_s15, %s635_s15   ;;  %s500_s14 = sphi %s533_s14, %s634_s14   ;;  %s496_s13 = sphi %s531_s13, %s633_s13   ;;  %s492_s12 = sphi %s529_s12, %s632_s12  }
   0x4   : > { %s554_s18 = sadd.s32 1, %s504_s15   ;;  %s96_s19 = sadd.s32 1, %s500_s14 }
   0x5   : > { %s93_s20 = ssub.s32 %s504_s15, %s554_s18  ;;  %p106_p0 = scmp.ne.s32.totalorder %s500_s14, %s496_s13 }
   0x6   : > { %p94_p1 = scmp.eq.s32.totalorder %s93_s20, 0  ;;  %p107_p2 = scmp.eq.s32.totalorder %s550_s16, 1 }
   0x7   : > { %p112_p3 = scmp.ne.s32.totalorder %s496_s13, %s492_s12  ;;  %p113_p4 = scmp.eq.s32.totalorder %s372_s17, 1 }
   0x8   : > { %s565_s21 = scalar_select %p94_p1, %s500_s14, %s96_s19  }
   0x9   : > { %p567_p5 = por %p107_p2, %p106_p0  ;;  %p571_p6 = por %p113_p4, %p112_p3 }
   0xa   : > { %p375_p7 = scmp.ge.s32.totalorder %s504_s15, 1  ;;  %p152_p8 = scmp.lt.s32.totalorder %s504_s15, 3 }
   0xc   : > { %p153_p9 = pnand %p375_p7, %p152_p8 }
   0xd   : > { %s377_s28 = sshll.u32 (!%p153_p9), %s550_s16, 1  ;;  %s178_s9 = sand.u32 (!%p153_p9), 1, %s496_s13  }
   0xe   : > { %156 = sbr.rel (%p153_p9) target bundleno = 189 (0xbd), region = 32  ;;  %p182_p10 = scmp.lt.s32.totalorder (!%p153_p9), %s377_s28, 3 }
   0xf   : > { %s376_s10 = sshll.u32 (!%p153_p9), %s178_s9, 4  ;;  %s388_s11 = sshll.u32 (!%p153_p9), %s550_s16, 4 }
  0x10   : > { %s294_s20 = scalar_lea.hbm (!%p153_p9), %s629_s3, %s388_s11  ;;  %s180_s24 = scalar_lea.vmem (!%p153_p9), [#allocation2], %s376_s10 }
  0x11   : > { %s295_s16 = sshll.u32 (!%p153_p9), %s180_s24, 4  ;;  %s297_s25 = sshll.u32 (!%p153_p9), %s294_s20, 4  ;;  %s296_s16 = int_to_ptr.vmem [resolvable:$true] %s295_s16  ;;  %s298_s25 = int_to_ptr.hbm [resolvable:$true] %s297_s25 }
  0x12   : > { %s283_s26 = scalar_lea.sflag (!%p153_p9), [#allocation3], %s178_s9  ;;  %s456_s27 = sshra.s32 (!%p153_p9), %s298_s25, 4  ;;  %s457_s27 = int_to_ptr.hbm [resolvable:$true] %s456_s27 }
  0x13   : > { %v197_v0 = vld [vmem:[%s626_s0 + $0x8] sm:$0xff]  ;;  %v196_v1 = vld [vmem:[%s626_s0] sm:$0xff]  ;;  %v506_v2 = vmov 0   ;;  %s637_s28 = smov (!%p182_p10, %s377_s28), 3  ;;  %vm210_vm0 = vcmask 130048   ;;  %s462_s4 = scalar_lea.hbm %s629_s3, 32 }
  0x14   : > { %231 = vmatpush.msra.mxu0 %v197_v0  ;;  %389 = vmatpush.msra.mxu1 %v197_v0  ;;  %s378_s29 = sshll.u32 %s637_s28, 3  ;;  %s458_s28 = scalar_lea.hbm %s457_s27, 16 }
  0x15   : > { %433 = vset.pattern.permute.xlu0 %v506_v2  ;;  %s191_s5 = scalar_lea.vmem %s628_s2, %s378_s29  ;;  %s185_s8 = scalar_lea.vmem %s627_s1, %s378_s29 }
  0x16   : > { %232 = vmatpush.msra.mxu0 %v196_v1  ;;  %390 = vmatpush.msra.mxu1 %v196_v1  ;;  %v198_v3 = vld [vmem:[%s191_s5] sm:$0xff]  ;;  %v195_v5 = vld [vmem:[%s185_s8 + $0x8] sm:$0xff]  ;;  %p459_p11 = scmp.ne.s32.totalorder %s457_s27, %s458_s28  ;;  %p463_p0 = scmp.lt.s32.totalorder %s457_s27, %s629_s3 }
  0x17   : > { %v194_v4 = vld [vmem:[%s185_s8] sm:$0xff]  ;;  %202 = vperm.xlu0 %433, %v198_v3   ;;  %382 = vmatmul.msk.f32.vlgmr.msra.gmra.mxu1 %vm210_vm0, %v195_v5  ;;  %v199_v6 = vld [vmem:[%s191_s5 + $0x8] sm:$0xff]  ;;  %p464_p1 = scmp.lt.s32.totalorder %s462_s4, %s458_s28 }
  0x18   : > { %381 = vmatmul.msk.f32.vlgmr.msra.gmra.mxu0 %vm210_vm0, %v194_v4  ;;  %p460_p12 = pnand %p459_p11, %p567_p5 }
  0x19   : > { %p465_p2 = por %p464_p1, %p463_p0 }
  0x1a   : > { %p461_p13 = pneg %p460_p12 }
  0x1c   : > { %p466_p3 = pnand %p465_p2, %p461_p13 }
  0x1f   : > { %207 = vperm.xlu0 %433, %v199_v6  }
  0x89   : > { %v203_v7 = vpop.permute.xlu0 %202 }
  0x91   : > { %v208_v9 = vpop.permute.xlu0 %207 }
  0x94   : > { %v237_v11 = vpop.f32.mrf.mxu1 }
  0x95   : > { %v234_v8 = vpop.f32.mrf.mxu0  ;;  %v238_v12 = vadd.f32 %v237_v11, %v208_v9 }
  0x96   : > { %v235_v10 = vadd.f32 %v234_v8, %v203_v7 }
  0x97   : > { %v241_v14 = vsub.f32 0.0, %v238_v12 }
  0x98   : > { %v240_v13 = vsub.f32 0.0, %v235_v10 }
  0x99   : > { %v244_v16 = vmul.f32 1.442695, %v241_v14 }
  0x9a   : > { %v242_v15 = vmul.f32 1.442695, %v240_v13 }
  0x9c   : > { %434 = vpow2.f32 %v242_v15 }
  0x9d   : > { %436 = vpow2.f32 %v244_v16 }
  0xa2   : > { %v435_v17 = vpop.eup %434 }
  0xa3   : > { %v437_v18 = vpop.eup %436  ;;  %v246_v19 = vadd.f32 1.0, %v435_v17 }
  0xa4   : > { %v247_v20 = vadd.f32 1.0, %v437_v18 }
  0xa5   : > { %438 = vrcp.f32 %v246_v19  ;;  %v259_v26 = vand.u32 2147483648, %v246_v19  ;;  %v257_v29 = vand.u32 2147483647, %v246_v19  ;;  %vm253_vm3 = vweird.f32 %v246_v19 }
  0xa6   : > { %440 = vrcp.f32 %v247_v20  ;;  %v274_v30 = vand.u32 2147483648, %v247_v20  ;;  %v272_v32 = vand.u32 2147483647, %v247_v20  ;;  %vm268_vm5 = vweird.f32 %v247_v20 }
  0xa7   : > { %v260_v34 = vor.u32 1.1754944e-38, %v259_v26  ;;  %vm258_vm6 = vcmp.eq.f32.partialorder %v257_v29, 8.507059e+37 }
  0xa8   : > { %v275_v37 = vor.u32 1.1754944e-38, %v274_v30  ;;  %vm273_vm8 = vcmp.eq.f32.partialorder %v272_v32, 8.507059e+37 }
  0xab   : > { %v439_v21 = vpop.eup %438 }
  0xac   : > { %v441_v22 = vpop.eup %440  ;;  %v249_v23 = vmul.f32 %v439_v21, %v246_v19  ;;  %vm254_vm1 = vweird.f32 %v439_v21 }
  0xad   : > { %v264_v24 = vmul.f32 %v441_v22, %v247_v20  ;;  %vm269_vm2 = vweird.f32 %v441_v22  ;;  %vm255_vm4 = vmor %vm253_vm3, %vm254_vm1 }
  0xae   : > { %v250_v25 = vsub.f32 1.0, %v249_v23  ;;  %vm270_vm7 = vmor %vm268_vm5, %vm269_vm2 }
  0xaf   : > { %v265_v27 = vsub.f32 1.0, %v264_v24 }
  0xb0   : > { %v251_v28 = vmul.f32 %v439_v21, %v250_v25 }
  0xb1   : > { %v266_v31 = vmul.f32 %v441_v22, %v265_v27 }
  0xb2   : > { %v252_v33 = vadd.f32 %v439_v21, %v251_v28 }
  0xb3   : > { %v267_v35 = vadd.f32 %v441_v22, %v266_v31 }
  0xb4   : > { %v256_v36 = vsel %vm255_vm4, %v439_v21, %v252_v33 }
  0xb5   : > { %v261_v38 = vsel %vm258_vm6, %v260_v34, %v256_v36  ;;  %v271_v39 = vsel %vm270_vm7, %v441_v22, %v267_v35 }
  0xb6   : > { %v278_v40 = vmul.f32 %v261_v38, %v235_v10  ;;  %v276_v41 = vsel %vm273_vm8, %v275_v37, %v271_v39 }
  0xb7   : > { %v279_v42 = vmul.f32 %v276_v41, %v238_v12 }
  0xb8   : > { %280 = vst [vmem:[%s180_s24] sm:$0xff] %v278_v40 }
  0xb9   : > { %281 = vst [vmem:[%s180_s24 + $0x8] sm:$0xff] %v279_v42 }
  0xba   : > { %469 = shalt.err (!%p466_p3)
}
  0xbb   : > { %s507_s7 = smov 128   ;;  %s508_s8 = smov 8  }
  0xbc   : > { %391 = dma.vmem_to_hbm [thread:$0]  (%p567_p5), %s296_s16, 256, %s298_s25, %s283_s26, %s507_s7, %s507_s7, %s508_s8  }
  0xbd PF: > { %p397_p4 = scmp.ge.s32.totalorder %s504_s15, 2  ;;  %s312_s9 = sand.u32 1, %s492_s12  }
  0xbe   : > { %s313_s10 = scalar_lea.sflag [#allocation3], %s312_s9 }
  0xbf   : > { %p394_p7 = pnand %p397_p4, %p571_p6 }
  0xc1   : > { %p395_p8 = pneg %p394_p7 }
  0xc3   : > { %487 = dma.done.wait (%p395_p8), %s313_s10, 256  }
  0xc4   : > { %489 = vsyncadd (%p395_p8), %s313_s10, 4294967040  ;;  %p13_p9 = scmp.ge.s32.totalorder %s554_s18, 4   ;;  %s632_s12 = smov %s496_s13 }
  0xc5   : > { %s633_s13 = smov %s500_s14  ;;  %s634_s14 = smov %s565_s21 }
  0xc6   : > { %s635_s15 = smov %s554_s18  ;;  %15 = sbr.rel (!%p13_p9) target bundleno = 3 (0x3), region = 70 }
  0xcb   :  { %319 = vsyncpa [#allocation3], 1 }
  0xcc   :  { %321 = vsyncpa [#allocation3 + $0x1], 1 }

</bundles_post_ra>
